<compile_context>
chip_gen: v5e
topology: v5e:2x2
jax: 0.10.0
libtpu: 0.0.40
codegen_flags: <defaults>
</compile_context>

<pallas_src>
import jax
import jax.numpy as jnp
from jax.experimental import pallas as pl
from jax.experimental.pallas import tpu as pltpu


def _proj_head_kernel(x_ref, w1_ref, b1_ref, w2_ref, b2_ref, o_ref,
                      h_acc, out_acc):
    nj = pl.program_id(1)           # hidden-dim tile (reduction axis of matmul 2)
    kk = pl.program_id(2)           # contraction tile of matmul 1
    nn = pl.num_programs(1)
    nk = pl.num_programs(2)

    @pl.when((nj == 0) & (kk == 0))
    def _init_out():
        out_acc[...] = jnp.zeros_like(out_acc)

    @pl.when(kk == 0)
    def _init_h():
        h_acc[...] = jnp.zeros_like(h_acc)

    # fc_layer1 partial product: x-tile @ w1-tile, f32 accumulation on the MXU.
    # LHS cast to the weight dtype keeps bf16 weights on the fast MXU path.
    h_acc[...] += jnp.dot(x_ref[...].astype(w1_ref.dtype), w1_ref[...],
                          preferred_element_type=jnp.float32)

    @pl.when(kk == nk - 1)
    def _second_matmul():
        # K reduction finished for this hidden tile: bias + ReLU (VPU), then
        # accumulate this hidden tile's fc_layer2 contribution.
        h = jnp.maximum(h_acc[...] + b1_ref[...], 0.0)
        out_acc[...] += jnp.dot(h.astype(w2_ref.dtype), w2_ref[...],
                                preferred_element_type=jnp.float32)

    @pl.when((nj == nn - 1) & (kk == nk - 1))
    def _finalize():
        o_ref[...] = (out_acc[...] + b2_ref[...]).astype(o_ref.dtype)


def _round_up(x, m):
    return (x + m - 1) // m * m


def _pick_tile(total_pad, target):
    """Pick a lane-aligned tile <= ~target that covers total_pad with minimal padding."""
    if total_pad <= target:
        return total_pad, total_pad
    ntiles = -(-total_pad // target)
    tile = _round_up(-(-total_pad // ntiles), 128)
    return tile, tile * ntiles


def _block_spec(shape, index_map, *, single_buffer=False):
    # Single-buffer blocks whose index never changes (resident weights/biases)
    # so their true VMEM footprint is 1x, not the default 2x.
    if single_buffer and hasattr(pl, "Buffered"):
        try:
            return pl.BlockSpec(shape, index_map, pipeline_mode=pl.Buffered(1))
        except TypeError:
            pass
    return pl.BlockSpec(shape, index_map)


def projection_head_forward(x, w1, b1, w2, b2, *, max_batch_tile=None):
    """Forward of Linear(input_dim->output_dim) -> ReLU -> Linear(output_dim->output_dim).

    x : [B, input_dim]
    w1: [input_dim, output_dim]   (transposed vs. PyTorch nn.Linear.weight)
    b1: [output_dim]
    w2: [output_dim, output_dim]
    b2: [output_dim]
    """
    B, K = x.shape
    N = w1.shape[1]
    x_itemsize = jnp.dtype(x.dtype).itemsize
    w_itemsize = jnp.dtype(w1.dtype).itemsize

    K_pad = _round_up(K, 128)
    N_pad = _round_up(N, 128)

    # ---- generation-aware VMEM budget --------------------------------------
    try:
        vmem_cap = int(pltpu.get_tpu_info().vmem_capacity_bytes)
    except Exception:
        vmem_cap = 64 * 1024 * 1024          # conservative (v7x) fallback
    vmem_budget = int(0.70 * vmem_cap)

    # Small feature dims -> overhead/HBM-bound: allow much larger batch tiles.
    if max_batch_tile is None:
        max_batch_tile = 2048 if (K_pad + N_pad) <= 512 else 512

    def vmem_bytes(TB, TK, TN, Kp, Np):
        resident = (TK == Kp and TN == Np)
        wbuf = 1 if resident else 2          # resident weights: single-buffered
        b = 2 * TB * TK * x_itemsize         # x tile (double-buffered)
        b += wbuf * TK * TN * w_itemsize     # w1 block
        b += wbuf * 8 * TN * w_itemsize      # b1 row (sublane-padded)
        b += wbuf * TN * Np * w_itemsize     # w2 block
        b += 1 * 8 * Np * w_itemsize         # b2 row (constant, single buffer)
        b += 2 * TB * Np * x_itemsize        # out tile (double-buffered)
        b += TB * TN * 4                     # f32 hidden accumulator scratch
        b += TB * Np * 4                     # f32 output accumulator scratch
        return b

    # ---- choose tiles -------------------------------------------------------
    TB0 = min(_round_up(B, 8), max_batch_tile)
    # v7x megacore: make sure there are >= 2 batch grid steps when possible.
    if B > 8:
        TB0 = min(TB0, max(8, _round_up((B + 1) // 2, 8)))

    # First try: weights fully resident in VMEM (single effective grid axis).
    TK, TN, Kp, Np = K_pad, N_pad, K_pad, N_pad
    TB = TB0
    while TB > 8 and vmem_bytes(TB, TK, TN, Kp, Np) > vmem_budget:
        TB = max(8, _round_up(TB // 2, 8))

    if vmem_bytes(TB, TK, TN, Kp, Np) > vmem_budget:
        # Fallback: tile the contraction (K) and hidden (N) dims for large models.
        tk_t = tn_t = 512
        TB = min(TB0, 256)
        TK, Kp = _pick_tile(K_pad, tk_t)
        TN, Np = _pick_tile(N_pad, tn_t)

        def _over():
            return vmem_bytes(TB, TK, TN, Kp, Np) > vmem_budget

        # Shrink in rough order of least performance impact.
        while TB > 128 and _over():
            TB = max(128, _round_up(TB // 2, 8))
        while tn_t > 256 and _over():
            tn_t //= 2
            TN, Np = _pick_tile(N_pad, tn_t)
        while tk_t > 256 and _over():
            tk_t //= 2
            TK, Kp = _pick_tile(K_pad, tk_t)
        while TB > 8 and _over():
            TB = max(8, _round_up(TB // 2, 8))
        while tn_t > 128 and _over():
            tn_t //= 2
            TN, Np = _pick_tile(N_pad, tn_t)
        while tk_t > 128 and _over():
            tk_t //= 2
            TK, Kp = _pick_tile(K_pad, tk_t)
        # TODO(synk): for extreme output_dim (the [TB, Np] f32 out accumulator alone
        # over budget) also tile the second matmul's output columns.

    resident = (TK == Kp and TN == Np)
    B_pad = _round_up(B, TB)

    # Zero padding is exact: padded lanes/rows contribute zeros through both
    # matmuls (zero bias in padded lanes, ReLU(0)=0) and are sliced off at the end.
    x_p = jnp.pad(x, ((0, B_pad - B), (0, Kp - K)))
    w1_p = jnp.pad(w1, ((0, Kp - K), (0, Np - N)))
    w2_p = jnp.pad(w2, ((0, Np - N), (0, Np - N)))
    b1_p = jnp.pad(b1, (0, Np - N)).reshape(1, Np)
    b2_p = jnp.pad(b2, (0, Np - N)).reshape(1, Np)

    grid = (B_pad // TB, Np // TN, Kp // TK)

    need = vmem_bytes(TB, TK, TN, Kp, Np)
    vmem_limit = int(min(max(2 * need, 32 << 20), vmem_cap - (16 << 20)))
    vmem_limit = int(max(vmem_limit, min(need + (4 << 20), vmem_cap)))

    n_hidden_tiles = Np // TN
    n_batch_tiles = B_pad // TB
    weight_reads = 1 if resident else n_batch_tiles
    flops = 2 * B_pad * Np * (Kp + Np)
    bytes_accessed = int(
        x_p.size * x_itemsize * (1 if resident else n_hidden_tiles)
        + (w1_p.size + w2_p.size + b1_p.size + b2_p.size) * w_itemsize * weight_reads
        + B_pad * Np * x_itemsize)

    in_specs = [
        pl.BlockSpec((TB, TK), lambda i, j, k: (i, k)),                      # x
        _block_spec((TK, TN), lambda i, j, k: (k, j), single_buffer=resident),  # w1
        _block_spec((1, TN), lambda i, j, k: (0, j), single_buffer=resident),   # b1
        _block_spec((TN, Np), lambda i, j, k: (j, 0), single_buffer=resident),  # w2
        _block_spec((1, Np), lambda i, j, k: (0, 0), single_buffer=True),       # b2
    ]

    out = pl.pallas_call(
        _proj_head_kernel,
        out_shape=jax.ShapeDtypeStruct((B_pad, Np), x.dtype),
        grid_spec=pltpu.PrefetchScalarGridSpec(
            num_scalar_prefetch=0,
            grid=grid,
            in_specs=in_specs,
            out_specs=pl.BlockSpec((TB, Np), lambda i, j, k: (i, 0)),
            scratch_shapes=[
                pltpu.VMEM((TB, TN), jnp.float32),   # h accumulator (fc1 output tile)
                pltpu.VMEM((TB, Np), jnp.float32),   # output accumulator (fc2)
            ],
        ),
        compiler_params=pltpu.CompilerParams(
            dimension_semantics=("parallel", "arbitrary", "arbitrary"),
            vmem_limit_bytes=vmem_limit,
        ),
        cost_estimate=pl.CostEstimate(
            flops=flops, transcendentals=0, bytes_accessed=bytes_accessed),
    )(x_p, w1_p, b1_p, w2_p, b2_p)

    return out[:B, :N]


if __name__ == "__main__":
    key = jax.random.PRNGKey(0)
    k_x, k_w1, k_b1, k_w2, k_b2 = jax.random.split(key, 5)

    batch = 8
    input_dim = 32
    output_dim = 32

    x = jax.random.normal(k_x, (batch, input_dim), dtype=jnp.float32)

    # Deterministic parameter init (uniform, akin to nn.Linear default scale).
    lim1 = 1.0 / (input_dim ** 0.5)
    lim2 = 1.0 / (output_dim ** 0.5)
    w1 = jax.random.uniform(k_w1, (input_dim, output_dim), jnp.float32, -lim1, lim1)
    b1 = jax.random.uniform(k_b1, (output_dim,), jnp.float32, -lim1, lim1)
    w2 = jax.random.uniform(k_w2, (output_dim, output_dim), jnp.float32, -lim2, lim2)
    b2 = jax.random.uniform(k_b2, (output_dim,), jnp.float32, -lim2, lim2)

    out = jax.block_until_ready(projection_head_forward(x, w1, b1, w2, b2))

    # Pure-JAX reference of the same forward pass.
    ref = jnp.maximum(x @ w1 + b1, 0.0) @ w2 + b2
    assert out.shape == (batch, output_dim)
    assert jnp.allclose(out, ref, atol=1e-5, rtol=1e-5)

    print("KERNEL_OK")
</pallas_src>

<mosaic_0001>
module attributes {stable_mosaic.version = 11 : i64} {
  func.func @_proj_head_kernel(%arg0: i32, %arg1: i32, %arg2: i32, %arg3: memref<8x128xf32, #tpu.memory_space<vmem>>, %arg4: memref<128x128xf32, #tpu.memory_space<vmem>>, %arg5: memref<1x128xf32, #tpu.memory_space<vmem>>, %arg6: memref<128x128xf32, #tpu.memory_space<vmem>>, %arg7: memref<1x128xf32, #tpu.memory_space<vmem>>, %arg8: memref<8x128xf32, #tpu.memory_space<vmem>>, %arg9: memref<8x128xf32, #tpu.memory_space<vmem>>, %arg10: memref<8x128xf32, #tpu.memory_space<vmem>>) attributes {dimension_semantics = [#tpu.dimension_semantics<parallel>, #tpu.dimension_semantics<arbitrary>, #tpu.dimension_semantics<arbitrary>], iteration_bounds = array<i64: 1, 1, 1>, scalar_prefetch = 0 : i64, scratch_operands = 2 : i64, tpu.core_type = #tpu.core_type<tc>, window_params = [{transform_indices = @transform_0, window_bounds = array<i64: 8, 128>}, {pipeline_mode = #tpu.pipeline_mode<synchronous>, transform_indices = @transform_1, window_bounds = array<i64: 128, 128>}, {pipeline_mode = #tpu.pipeline_mode<synchronous>, transform_indices = @transform_2, window_bounds = array<i64: 1, 128>}, {pipeline_mode = #tpu.pipeline_mode<synchronous>, transform_indices = @transform_3, window_bounds = array<i64: 128, 128>}, {pipeline_mode = #tpu.pipeline_mode<synchronous>, transform_indices = @transform_4, window_bounds = array<i64: 1, 128>}, {transform_indices = @transform_5, window_bounds = array<i64: 8, 128>}]} {
    %c0_i32 = arith.constant 0 : i32
    %0 = arith.cmpi eq, %arg1, %c0_i32 : i32
    %c0_i32_0 = arith.constant 0 : i32
    %1 = arith.cmpi eq, %arg2, %c0_i32_0 : i32
    %2 = arith.andi %0, %1 : i1
    %3 = arith.extui %2 : i1 to i32
    %c0_i32_1 = arith.constant 0 : i32
    %4 = arith.cmpi ne, %3, %c0_i32_1 : i32
    scf.if %4 {
      %cst_16 = arith.constant 0.000000e+00 : f32
      %22 = vector.broadcast %cst_16 : f32 to vector<8x128xf32>
      %c0_17 = arith.constant 0 : index
      %c0_18 = arith.constant 0 : index
      %23 = vector.load %arg10[%c0_17, %c0_18] : memref<8x128xf32, #tpu.memory_space<vmem>>, vector<8x128xf32>
      tpu.vector_store %arg10[%c0_17, %c0_18], %22 {strides = array<i32>} : memref<8x128xf32, #tpu.memory_space<vmem>>, vector<8x128xf32>,
    } else {
    }
    %c0_i32_2 = arith.constant 0 : i32
    %5 = arith.cmpi eq, %arg2, %c0_i32_2 : i32
    %6 = arith.extui %5 : i1 to i32
    %c0_i32_3 = arith.constant 0 : i32
    %7 = arith.cmpi ne, %6, %c0_i32_3 : i32
    scf.if %7 {
      %cst_16 = arith.constant 0.000000e+00 : f32
      %22 = vector.broadcast %cst_16 : f32 to vector<8x128xf32>
      %c0_17 = arith.constant 0 : index
      %c0_18 = arith.constant 0 : index
      %23 = vector.load %arg9[%c0_17, %c0_18] : memref<8x128xf32, #tpu.memory_space<vmem>>, vector<8x128xf32>
      tpu.vector_store %arg9[%c0_17, %c0_18], %22 {strides = array<i32>} : memref<8x128xf32, #tpu.memory_space<vmem>>, vector<8x128xf32>,
    } else {
    }
    %c0 = arith.constant 0 : index
    %c0_4 = arith.constant 0 : index
    %8 = vector.load %arg9[%c0, %c0_4] : memref<8x128xf32, #tpu.memory_space<vmem>>, vector<8x128xf32>
    %c0_5 = arith.constant 0 : index
    %c0_6 = arith.constant 0 : index
    %9 = vector.load %arg3[%c0_5, %c0_6] : memref<8x128xf32, #tpu.memory_space<vmem>>, vector<8x128xf32>
    %c0_7 = arith.constant 0 : index
    %c0_8 = arith.constant 0 : index
    %10 = vector.load %arg4[%c0_7, %c0_8] : memref<128x128xf32, #tpu.memory_space<vmem>>, vector<128x128xf32>
    %cst = arith.constant dense<0.000000e+00> : vector<8x128xf32>
    %11 = tpu.matmul %9, %10, %cst {dimension_numbers = #tpu.dot_dimension_numbers<[1], [0], [0], [1], [0, 0, 1, 1], [], []>} : vector<8x128xf32>, vector<128x128xf32>, vector<8x128xf32> -> vector<8x128xf32>
    %12 = arith.addf %8, %11 : vector<8x128xf32>
    %c0_9 = arith.constant 0 : index
    %c0_10 = arith.constant 0 : index
    %13 = vector.load %arg9[%c0_9, %c0_10] : memref<8x128xf32, #tpu.memory_space<vmem>>, vector<8x128xf32>
    tpu.vector_store %arg9[%c0_9, %c0_10], %12 {strides = array<i32>} : memref<8x128xf32, #tpu.memory_space<vmem>>, vector<8x128xf32>,
    %c0_i32_11 = arith.constant 0 : i32
    %14 = arith.cmpi eq, %arg2, %c0_i32_11 : i32
    %15 = arith.extui %14 : i1 to i32
    %c0_i32_12 = arith.constant 0 : i32
    %16 = arith.cmpi ne, %15, %c0_i32_12 : i32
    scf.if %16 {
      %c0_16 = arith.constant 0 : index
      %c0_17 = arith.constant 0 : index
      %22 = vector.load %arg9[%c0_16, %c0_17] : memref<8x128xf32, #tpu.memory_space<vmem>>, vector<8x128xf32>
      %c0_18 = arith.constant 0 : index
      %c0_19 = arith.constant 0 : index
      %23 = vector.load %arg5[%c0_18, %c0_19] : memref<1x128xf32, #tpu.memory_space<vmem>>, vector<1x128xf32>
      %24 = vector.broadcast %23 : vector<1x128xf32> to vector<8x128xf32>
      %25 = arith.addf %22, %24 : vector<8x128xf32>
      %cst_20 = arith.constant 0.000000e+00 : f32
      %26 = vector.broadcast %cst_20 : f32 to vector<8x128xf32>
      %27 = arith.maximumf %25, %26 : vector<8x128xf32>
      %c0_21 = arith.constant 0 : index
      %c0_22 = arith.constant 0 : index
      %28 = vector.load %arg10[%c0_21, %c0_22] : memref<8x128xf32, #tpu.memory_space<vmem>>, vector<8x128xf32>
      %c0_23 = arith.constant 0 : index
      %c0_24 = arith.constant 0 : index
      %29 = vector.load %arg6[%c0_23, %c0_24] : memref<128x128xf32, #tpu.memory_space<vmem>>, vector<128x128xf32>
      %cst_25 = arith.constant dense<0.000000e+00> : vector<8x128xf32>
      %30 = tpu.matmul %27, %29, %cst_25 {dimension_numbers = #tpu.dot_dimension_numbers<[1], [0], [0], [1], [0, 0, 1, 1], [], []>} : vector<8x128xf32>, vector<128x128xf32>, vector<8x128xf32> -> vector<8x128xf32>
      %31 = arith.addf %28, %30 : vector<8x128xf32>
      %c0_26 = arith.constant 0 : index
      %c0_27 = arith.constant 0 : index
      %32 = vector.load %arg10[%c0_26, %c0_27] : memref<8x128xf32, #tpu.memory_space<vmem>>, vector<8x128xf32>
      tpu.vector_store %arg10[%c0_26, %c0_27], %31 {strides = array<i32>} : memref<8x128xf32, #tpu.memory_space<vmem>>, vector<8x128xf32>,
    } else {
    }
    %c0_i32_13 = arith.constant 0 : i32
    %17 = arith.cmpi eq, %arg1, %c0_i32_13 : i32
    %c0_i32_14 = arith.constant 0 : i32
    %18 = arith.cmpi eq, %arg2, %c0_i32_14 : i32
    %19 = arith.andi %17, %18 : i1
    %20 = arith.extui %19 : i1 to i32
    %c0_i32_15 = arith.constant 0 : i32
    %21 = arith.cmpi ne, %20, %c0_i32_15 : i32
    scf.if %21 {
      %c0_16 = arith.constant 0 : index
      %c0_17 = arith.constant 0 : index
      %22 = vector.load %arg10[%c0_16, %c0_17] : memref<8x128xf32, #tpu.memory_space<vmem>>, vector<8x128xf32>
      %c0_18 = arith.constant 0 : index
      %c0_19 = arith.constant 0 : index
      %23 = vector.load %arg7[%c0_18, %c0_19] : memref<1x128xf32, #tpu.memory_space<vmem>>, vector<1x128xf32>
      %24 = vector.broadcast %23 : vector<1x128xf32> to vector<8x128xf32>
      %25 = arith.addf %22, %24 : vector<8x128xf32>
      %c0_20 = arith.constant 0 : index
      %c0_21 = arith.constant 0 : index
      %26 = vector.load %arg8[%c0_20, %c0_21] : memref<8x128xf32, #tpu.memory_space<vmem>>, vector<8x128xf32>
      tpu.vector_store %arg8[%c0_20, %c0_21], %25 {strides = array<i32>} : memref<8x128xf32, #tpu.memory_space<vmem>>, vector<8x128xf32>,
    } else {
    }
    return
  }
  func.func @transform_0(%arg0: i32, %arg1: i32, %arg2: i32) -> (i32, i32) {
    %c0_i32 = arith.constant 0 : i32
    return %arg0, %arg2 : i32, i32
  }
  func.func @transform_1(%arg0: i32, %arg1: i32, %arg2: i32) -> (i32, i32) {
    %c0_i32 = arith.constant 0 : i32
    return %arg2, %arg1 : i32, i32
  }
  func.func @transform_2(%arg0: i32, %arg1: i32, %arg2: i32) -> (i32, i32) {
    %c0_i32 = arith.constant 0 : i32
    %c0_i32_0 = arith.constant 0 : i32
    return %c0_i32, %arg1 : i32, i32
  }
  func.func @transform_3(%arg0: i32, %arg1: i32, %arg2: i32) -> (i32, i32) {
    %c0_i32 = arith.constant 0 : i32
    %c0_i32_0 = arith.constant 0 : i32
    return %arg1, %c0_i32 : i32, i32
  }
  func.func @transform_4(%arg0: i32, %arg1: i32, %arg2: i32) -> (i32, i32) {
    %c0_i32 = arith.constant 0 : i32
    %c0_i32_0 = arith.constant 0 : i32
    %c0_i32_1 = arith.constant 0 : i32
    return %c0_i32, %c0_i32_0 : i32, i32
  }
  func.func @transform_5(%arg0: i32, %arg1: i32, %arg2: i32) -> (i32, i32) {
    %c0_i32 = arith.constant 0 : i32
    %c0_i32_0 = arith.constant 0 : i32
    return %arg0, %c0_i32 : i32, i32
  }
}

</mosaic_0001>

<bundles_post_ra>
// kernel: tpu_custom_call.1
= control target key start
LH: loop header
LB: loop body
LE: loop exit
PB: predicated region body
PF: predicated region fallthrough
CT: control target
= control target key end

     0   :  { %10 = vsyncpa [#allocation5], 0  ;;  %s357_s0 = inlined_call_operand.hbm [shape: f32[8,128], index: 0, kind: input, shape index: {}]   ;;  %s358_s1 = inlined_call_operand.hbm [shape: f32[128,128], index: 1, kind: input, shape index: {}]   ;;  %s359_s2 = inlined_call_operand.vmem [shape: f32[1,128], index: 2, kind: input, shape index: {}]   ;;  %s360_s3 = inlined_call_operand.hbm [shape: f32[128,128], index: 3, kind: input, shape index: {}]   ;;  %s361_s4 = inlined_call_operand.vmem [shape: f32[1,128], index: 4, kind: input, shape index: {}]   ;;  %s362_s5 = inlined_call_operand.hbm [shape: f32[8,128], index: 5, kind: output, shape index: {}]  }
   0x1   :  { %11 = vsyncpa [#allocation8], 0  ;;  %s28_s20 = sshll.u32 %s358_s1, 4  ;;  %s29_s20 = int_to_ptr.hbm [resolvable:$true] %s28_s20 }
   0x2   :  { %12 = vsyncpa [#allocation6], 0  ;;  %s303_s21 = smov [#allocation7]   ;;  %s18_s25 = sshll.u32 %s357_s0, 4  ;;  %s19_s25 = int_to_ptr.hbm [resolvable:$true] %s18_s25 }
   0x3   :  { %s30_s22 = sshll.u32 %s303_s21, 4  ;;  %s304_s26 = smov 128   ;;  %s31_s22 = int_to_ptr.vmem [resolvable:$true] %s30_s22 }
   0x4   :  { %s305_s27 = smov 8   ;;  %s306_s28 = smov [#allocation4]  }
   0x5   :  { %36 = dma.hbm_to_vmem [thread:$0]  %s29_s20, 2048, %s31_s22, [#allocation8], %s304_s26, %s304_s26, %s305_s27  }
   0x6   :  { %s20_s29 = sshll.u32 %s306_s28, 4  ;;  %s43_s7 = sshll.u32 %s360_s3, 4  ;;  %s21_s29 = int_to_ptr.vmem [resolvable:$true] %s20_s29  ;;  %s44_s7 = int_to_ptr.hbm [resolvable:$true] %s43_s7 }
   0x7   :  { %23 = dma.hbm_to_vmem [thread:$0]  %s19_s25, 128, %s21_s29, [#allocation5]  }
   0x8   :  { %s307_s1 = smov [#allocation9]  }
   0x9   :  { %s45_s8 = sshll.u32 %s307_s1, 4  ;;  %s46_s8 = int_to_ptr.vmem [resolvable:$true] %s45_s8 }
   0xa   :  { %51 = dma.hbm_to_vmem [thread:$0]  %s44_s7, 2048, %s46_s8, [#allocation8], %s304_s26, %s304_s26, %s305_s27  }
   0xb   :  { %297 = dma.done.wait [#allocation5], 128  }
   0xc   :  { %298 = vsyncadd [#allocation5], 4294967168 }
   0xd   :  { %299 = dma.done.wait [#allocation8], 4096  }
   0xe   :  { %300 = vsyncadd [#allocation8], 4294963200  ;;  %v94_v0 = vld [vmem:[#allocation7 + $0x78] sm:$0xff]  ;;  %v93_v1 = vld [vmem:[#allocation7 + $0x70] sm:$0xff]  ;;  %s308_s11 = smov [#allocation10]   ;;  %s182_s15 = sshll.u32 %s362_s5, 4  ;;  %s183_s15 = int_to_ptr.hbm [resolvable:$true] %s182_s15 }
   0xf   :  { %95 = vmatpush.msra.mxu0 %v94_v0  ;;  %v92_v2 = vld [vmem:[#allocation7 + $0x68] sm:$0xff]  ;;  %v91_v3 = vld [vmem:[#allocation7 + $0x60] sm:$0xff]  ;;  %v143_v4 = vld [vmem:[#allocation9 + $0x78] sm:$0xff]  ;;  %s180_s12 = sshll.u32 %s308_s11, 4  ;;  %s181_s12 = int_to_ptr.vmem [resolvable:$true] %s180_s12 }
  0x10   :  { %v90_v5 = vld [vmem:[#allocation7 + $0x58] sm:$0xff]  ;;  %144 = vmatpush.msra.mxu1 %v143_v4  ;;  %v142_v6 = vld [vmem:[#allocation9 + $0x70] sm:$0xff]  ;;  %v141_v7 = vld [vmem:[#allocation9 + $0x68] sm:$0xff] }
  0x11   :  { %96 = vmatpush.msra.mxu0 %v93_v1  ;;  %v89_v8 = vld [vmem:[#allocation7 + $0x50] sm:$0xff]  ;;  %v140_v9 = vld [vmem:[#allocation9 + $0x60] sm:$0xff]  ;;  %v88_v10 = vld [vmem:[#allocation7 + $0x48] sm:$0xff] }
  0x12   :  { %145 = vmatpush.msra.mxu1 %v142_v6  ;;  %v139_v11 = vld [vmem:[#allocation9 + $0x58] sm:$0xff]  ;;  %v87_v12 = vld [vmem:[#allocation7 + $0x40] sm:$0xff]  ;;  %v138_v13 = vld [vmem:[#allocation9 + $0x50] sm:$0xff] }
  0x13   :  { %97 = vmatpush.msra.mxu0 %v92_v2  ;;  %v86_v14 = vld [vmem:[#allocation7 + $0x38] sm:$0xff]  ;;  %v137_v15 = vld [vmem:[#allocation9 + $0x48] sm:$0xff]  ;;  %v85_v16 = vld [vmem:[#allocation7 + $0x30] sm:$0xff] }
  0x14   :  { %146 = vmatpush.msra.mxu1 %v141_v7  ;;  %v136_v17 = vld [vmem:[#allocation9 + $0x40] sm:$0xff]  ;;  %v84_v18 = vld [vmem:[#allocation7 + $0x28] sm:$0xff]  ;;  %v135_v19 = vld [vmem:[#allocation9 + $0x38] sm:$0xff] }
  0x15   :  { %98 = vmatpush.msra.mxu0 %v91_v3  ;;  %v83_v20 = vld [vmem:[#allocation7 + $0x20] sm:$0xff]  ;;  %v134_v21 = vld [vmem:[#allocation9 + $0x30] sm:$0xff]  ;;  %v82_v22 = vld [vmem:[#allocation7 + $0x18] sm:$0xff] }
  0x16   :  { %147 = vmatpush.msra.mxu1 %v140_v9  ;;  %v133_v23 = vld [vmem:[#allocation9 + $0x28] sm:$0xff]  ;;  %v81_v24 = vld [vmem:[#allocation7 + $0x10] sm:$0xff]  ;;  %v132_v25 = vld [vmem:[#allocation9 + $0x20] sm:$0xff] }
  0x17   :  { %99 = vmatpush.msra.mxu0 %v90_v5  ;;  %v80_v26 = vld [vmem:[#allocation7 + $0x8] sm:$0xff]  ;;  %v131_v27 = vld [vmem:[#allocation9 + $0x18] sm:$0xff]  ;;  %v79_v28 = vld [vmem:[#allocation7] sm:$0xff] }
  0x18   :  { %148 = vmatpush.msra.mxu1 %v139_v11  ;;  %v78_v29 = vld [vmem:[#allocation4] sm:$0xff]  ;;  %v130_v30 = vld [vmem:[#allocation9 + $0x10] sm:$0xff]  ;;  %v129_v31 = vld [vmem:[#allocation9 + $0x8] sm:$0xff] }
  0x19   :  { %100 = vmatpush.msra.mxu0 %v89_v8  ;;  %v128_v32 = vld [vmem:[#allocation9] sm:$0xff]  ;;  %v199_v33 = vld [vmem:[%s359_s2] ss:$0 sm:$0xff] }
  0x1a   :  { %149 = vmatpush.msra.mxu1 %v138_v13  ;;  %v200_v37 = vld [vmem:[%s361_s4] ss:$0 sm:$0xff] }
  0x1b   :  { %101 = vmatpush.msra.mxu0 %v88_v10 }
  0x1c   :  { %150 = vmatpush.msra.mxu1 %v137_v15 }
  0x1d   :  { %102 = vmatpush.msra.mxu0 %v87_v12 }
  0x1e   :  { %151 = vmatpush.msra.mxu1 %v136_v17 }
  0x1f   :  { %103 = vmatpush.msra.mxu0 %v86_v14 }
  0x20   :  { %152 = vmatpush.msra.mxu1 %v135_v19 }
  0x21   :  { %104 = vmatpush.msra.mxu0 %v85_v16 }
  0x22   :  { %153 = vmatpush.msra.mxu1 %v134_v21 }
  0x23   :  { %105 = vmatpush.msra.mxu0 %v84_v18 }
  0x24   :  { %154 = vmatpush.msra.mxu1 %v133_v23 }
  0x25   :  { %106 = vmatpush.msra.mxu0 %v83_v20 }
  0x26   :  { %155 = vmatpush.msra.mxu1 %v132_v25 }
  0x27   :  { %107 = vmatpush.msra.mxu0 %v82_v22 }
  0x28   :  { %156 = vmatpush.msra.mxu1 %v131_v27 }
  0x29   :  { %108 = vmatpush.msra.mxu0 %v81_v24 }
  0x2a   :  { %157 = vmatpush.msra.mxu1 %v130_v30 }
  0x2b   :  { %109 = vmatpush.msra.mxu0 %v80_v26 }
  0x2c   :  { %158 = vmatpush.msra.mxu1 %v129_v31 }
  0x2d   :  { %110 = vmatpush.msra.mxu0 %v79_v28 }
  0x2e   :  { %111 = vmatmul.f32.vlgmr.msra.gmra.mxu0 %v78_v29  ;;  %159 = vmatpush.msra.mxu1 %v128_v32 }
  0xab   :  { %v112_v34 = vpop.f32.mrf.mxu0 }
  0xac   :  { %v125_v35 = vadd.f32 %v199_v33, %v112_v34 }
  0xae   :  { %v126_v36 = vmax.f32 %v125_v35, 0.0 }
  0xb0   :  { %160 = vmatmul.f32.vlgmr.msra.gmra.mxu1 %v126_v36 }
 0x12d   :  { %v161_v38 = vpop.f32.mrf.mxu1 }
 0x12e   :  { %v173_v39 = vadd.f32 %v200_v37, %v161_v38 }
 0x130   :  { %174 = vst [vmem:[#allocation10] sm:$0xff] %v173_v39 }
 0x131   :  { %185 = dma.vmem_to_hbm [thread:$0]  %s181_s12, 128, %s183_s15, [#allocation6]  }
 0x132   :  { %301 = dma.done.wait [#allocation6], 128  }
 0x133   :  { %302 = vsyncadd [#allocation6], 4294967168 }
 0x134   :  { %190 = vsyncpa [#allocation5], 1 }
 0x135   :  { %191 = vsyncpa [#allocation8], 1 }
 0x136   :  { %192 = vsyncpa [#allocation6], 1 }

</bundles_post_ra>
